<compile_context>
chip_gen: v7x
topology: tpu7x:2x2x1
jax: 0.10.0
libtpu: 0.0.40
codegen_flags: <defaults>
</compile_context>

<pallas_src>
import jax
import jax.numpy as jnp
from jax.experimental import pallas as pl
from jax.experimental.pallas import tpu as pltpu


def _round_up(x, m):
    return ((x + m - 1) // m) * m


def _divisor_tile(dim, target, align):
    """Largest multiple of `align` that divides `dim` and is <= max(target, align).

    Assumes dim % align == 0, so the loop always terminates (worst case `align`).
    """
    t = max(align, (min(target, dim) // align) * align)
    while dim % t:
        t -= align
    return t


# --------------------------------------------------------------------------- #
# Kernels
# --------------------------------------------------------------------------- #
def _residual_linear_single_block_kernel(x_ref, w_ref, b_ref, o_ref):
    """out = x @ W + b + x for one (tm, Hp) row block (whole hidden in one block).

    x is loaded once (f32): it feeds both the MXU (bf16 cast in-register) and the
    exact f32 residual add. No scratch accumulator, no pl.when.
    """
    x = x_ref[...]
    acc = jnp.dot(
        x.astype(jnp.bfloat16),
        w_ref[...].astype(jnp.bfloat16),
        preferred_element_type=jnp.float32,
    )
    o_ref[...] = acc + b_ref[...] + x


def _residual_linear_tiled_kernel(x_mm_ref, w_ref, b_ref, x_res_ref, o_ref):
    """out[i,j] = sum_k x[i,k] @ W[k,j] + b[j] + x[i,j], accumulated in o_ref.

    The output block index is constant over k, so the f32 output tile stays
    VMEM-resident across the reduction — no scratch accumulator needed.
    """
    k = pl.program_id(2)

    @pl.when(k == 0)
    def _():
        # Bias + residual seed the accumulator (exact f32 residual add).
        o_ref[...] = b_ref[...] + x_res_ref[...]

    o_ref[...] += jnp.dot(
        x_mm_ref[...].astype(jnp.bfloat16),
        w_ref[...].astype(jnp.bfloat16),
        preferred_element_type=jnp.float32,
    )


# --------------------------------------------------------------------------- #
# Wrapper
# --------------------------------------------------------------------------- #
def residual_connection_layer(x, w, b, *, tile_m=512, tile_n=512, tile_k=1024):
    """out = sub_layer(x) + x with sub_layer = Linear(w, b), fused in Pallas.

    x: [B, S, H] float32;  w: [H, H] float32;  b: [H] or [1, H] float32.
    """
    B, S, H = x.shape
    M = B * S
    x2 = x.reshape(M, H)
    w2 = jnp.asarray(w, jnp.float32).reshape(H, H)
    b2 = jnp.asarray(b, jnp.float32).reshape(1, H)

    # Hidden: lane-align only when needed.
    Hp = _round_up(H, 128)

    # Rows: pad only to a sublane multiple, pick tm as a divisor of Mp so the
    # grid divides exactly. Only for pathological M (no decent divisor) fall
    # back to 256-row tiles (bounded padding waste).
    Mp = _round_up(M, 8)
    tm = _divisor_tile(Mp, tile_m, 8)
    if tm < 64 and Mp > max(tile_m, 512):
        tm = max(8, (min(tile_m, 256) // 8) * 8)
        Mp = _round_up(M, tm)

    needs_pad = (Hp != H) or (Mp != M)
    if needs_pad:
        x_p = jnp.zeros((Mp, Hp), jnp.float32).at[:M, :H].set(x2)
        w_p = jnp.zeros((Hp, Hp), jnp.float32).at[:H, :H].set(w2)
        b_p = jnp.zeros((1, Hp), jnp.float32).at[:, :H].set(b2)
    else:
        # Fast path (normal transformer shapes): zero wrapper-side HBM copies.
        x_p, w_p, b_p = x2, w2, b2

    vmem_limit = 48 * 1024 * 1024  # <= v7x 64 MiB physical, leaves headroom.

    # Single hidden block: whole H fits one (n, k) block (common H <= 1024 case).
    single_block = (Hp <= 1024) and (tile_k >= Hp)

    if single_block:
        grid = (Mp // tm,)
        cost = pl.CostEstimate(
            flops=2 * Mp * Hp * Hp + 2 * Mp * Hp,
            transcendentals=0,
            bytes_accessed=2 * Mp * Hp * 4 + Hp * Hp * 4 + Hp * 4,
        )
        out_p = pl.pallas_call(
            _residual_linear_single_block_kernel,
            out_shape=jax.ShapeDtypeStruct((Mp, Hp), jnp.float32),
            grid_spec=pltpu.PrefetchScalarGridSpec(
                num_scalar_prefetch=0,
                grid=grid,
                in_specs=[
                    pl.BlockSpec((tm, Hp), lambda i: (i, 0)),   # x (read once)
                    pl.BlockSpec((Hp, Hp), lambda i: (0, 0)),   # W (fetched once)
                    pl.BlockSpec((1, Hp), lambda i: (0, 0)),    # bias (fetched once)
                ],
                out_specs=pl.BlockSpec((tm, Hp), lambda i: (i, 0)),
            ),
            compiler_params=pltpu.CompilerParams(
                dimension_semantics=("parallel",),
                vmem_limit_bytes=vmem_limit,
            ),
            cost_estimate=cost,
        )(x_p, w_p, b_p)
    else:
        # tn / tk are 128-aligned divisors of Hp -> exact grid, no dropped columns.
        tn = _divisor_tile(Hp, tile_n, 128)
        tk = _divisor_tile(Hp, tile_k, 128)
        grid = (Mp // tm, Hp // tn, Hp // tk)
        n_i, n_j = grid[0], grid[1]
        cost = pl.CostEstimate(
            flops=2 * Mp * Hp * Hp + 2 * Mp * Hp,
            transcendentals=0,
            bytes_accessed=(Mp * Hp * 4 * n_j     # x matmul stream (re-read per j)
                            + Hp * Hp * 4 * n_i   # W stream (re-read per i)
                            + Mp * Hp * 4         # residual x (once per (i, j))
                            + Mp * Hp * 4         # output
                            + Hp * 4 * n_i),      # bias
        )
        out_p = pl.pallas_call(
            _residual_linear_tiled_kernel,
            out_shape=jax.ShapeDtypeStruct((Mp, Hp), jnp.float32),
            grid_spec=pltpu.PrefetchScalarGridSpec(
                num_scalar_prefetch=0,
                grid=grid,
                in_specs=[
                    pl.BlockSpec((tm, tk), lambda i, j, k: (i, k)),  # x (matmul)
                    pl.BlockSpec((tk, tn), lambda i, j, k: (k, j)),  # W
                    pl.BlockSpec((1, tn), lambda i, j, k: (0, j)),   # bias (const over k)
                    pl.BlockSpec((tm, tn), lambda i, j, k: (i, j)),  # x (residual, const over k)
                ],
                out_specs=pl.BlockSpec((tm, tn), lambda i, j, k: (i, j)),
            ),
            compiler_params=pltpu.CompilerParams(
                dimension_semantics=("parallel", "parallel", "arbitrary"),
                vmem_limit_bytes=vmem_limit,
            ),
            cost_estimate=cost,
        )(x_p, w_p, b_p, x_p)  # x passed twice: matmul stream + residual stream

    if needs_pad:
        out_p = out_p[:M, :H]
    return out_p.reshape(B, S, H)


def _reference(x, w, b):
    B, S, H = x.shape
    return jnp.einsum("bsh,hk->bsk", x, w) + b.reshape(1, 1, H) + x


if __name__ == "__main__":
    # 1) Module-sized demo (batch=2, seq=8, hidden=32): H needs lane padding,
    #    single-hidden-block kernel path.
    B, S, H = 2, 8, 32
    kx, kw, kb = jax.random.split(jax.random.PRNGKey(0), 3)
    x = jax.random.normal(kx, (B, S, H), dtype=jnp.float32)
    # Deterministic sub-layer (Linear) parameters — synthetic, not a checkpoint.
    w = jax.random.normal(kw, (H, H), dtype=jnp.float32) * 0.05
    b = jax.random.normal(kb, (1, H), dtype=jnp.float32) * 0.01
    out = jax.block_until_ready(residual_connection_layer(x, w, b))
    assert out.shape == (B, S, H)
    # bf16 matmul inputs with f32 accumulation -> loose tolerance vs f32 reference.
    assert jnp.allclose(out, _reference(x, w, b), atol=3e-2, rtol=3e-2)

    # 2) Lane-aligned fast path (no wrapper padding copies at all): hidden=128.
    B2, S2, H2 = 2, 64, 128
    kx2, kw2, kb2 = jax.random.split(jax.random.PRNGKey(1), 3)
    x2 = jax.random.normal(kx2, (B2, S2, H2), dtype=jnp.float32)
    w2 = jax.random.normal(kw2, (H2, H2), dtype=jnp.float32) * 0.05
    b2 = jax.random.normal(kb2, (1, H2), dtype=jnp.float32) * 0.01
    out2 = jax.block_until_ready(residual_connection_layer(x2, w2, b2))
    assert jnp.allclose(out2, _reference(x2, w2, b2), atol=3e-2, rtol=3e-2)

    # 3) Exercise the tiled / k-accumulating kernel at small shapes by forcing
    #    small hidden tiles (grid = (1, 2, 2)).
    B3, S3, H3 = 2, 8, 256
    kx3, kw3, kb3 = jax.random.split(jax.random.PRNGKey(2), 3)
    x3 = jax.random.normal(kx3, (B3, S3, H3), dtype=jnp.float32)
    w3 = jax.random.normal(kw3, (H3, H3), dtype=jnp.float32) * 0.05
    b3 = jax.random.normal(kb3, (1, H3), dtype=jnp.float32) * 0.01
    out3 = jax.block_until_ready(
        residual_connection_layer(x3, w3, b3, tile_n=128, tile_k=128))
    assert jnp.allclose(out3, _reference(x3, w3, b3), atol=3e-2, rtol=3e-2)

    print("KERNEL_OK")
</pallas_src>

<mosaic_0001>
module attributes {stable_mosaic.version = 11 : i64} {
  func.func @_residual_linear_single_block_kernel(%arg0: i32, %arg1: memref<16x128xf32, #tpu.memory_space<vmem>>, %arg2: memref<128x128xf32, #tpu.memory_space<vmem>>, %arg3: memref<1x128xf32, #tpu.memory_space<vmem>>, %arg4: memref<16x128xf32, #tpu.memory_space<vmem>>) attributes {dimension_semantics = [#tpu.dimension_semantics<parallel>], iteration_bounds = array<i64: 1>, scalar_prefetch = 0 : i64, scratch_operands = 0 : i64, tpu.core_type = #tpu.core_type<tc>, window_params = [{transform_indices = @transform_0, window_bounds = array<i64: 16, 128>}, {pipeline_mode = #tpu.pipeline_mode<synchronous>, transform_indices = @transform_1, window_bounds = array<i64: 128, 128>}, {pipeline_mode = #tpu.pipeline_mode<synchronous>, transform_indices = @transform_2, window_bounds = array<i64: 1, 128>}, {transform_indices = @transform_3, window_bounds = array<i64: 16, 128>}]} {
    %c0 = arith.constant 0 : index
    %c0_0 = arith.constant 0 : index
    %0 = vector.load %arg1[%c0, %c0_0] : memref<16x128xf32, #tpu.memory_space<vmem>>, vector<16x128xf32>
    %1 = arith.truncf %0 : vector<16x128xf32> to vector<16x128xbf16>
    %c0_1 = arith.constant 0 : index
    %c0_2 = arith.constant 0 : index
    %2 = vector.load %arg2[%c0_1, %c0_2] : memref<128x128xf32, #tpu.memory_space<vmem>>, vector<128x128xf32>
    %3 = arith.truncf %2 : vector<128x128xf32> to vector<128x128xbf16>
    %cst = arith.constant dense<0.000000e+00> : vector<16x128xf32>
    %4 = tpu.matmul %1, %3, %cst {dimension_numbers = #tpu.dot_dimension_numbers<[1], [0], [0], [1], [0, 0, 1, 1], [], []>} : vector<16x128xbf16>, vector<128x128xbf16>, vector<16x128xf32> -> vector<16x128xf32>
    %c0_3 = arith.constant 0 : index
    %c0_4 = arith.constant 0 : index
    %5 = vector.load %arg3[%c0_3, %c0_4] : memref<1x128xf32, #tpu.memory_space<vmem>>, vector<1x128xf32>
    %6 = vector.broadcast %5 : vector<1x128xf32> to vector<16x128xf32>
    %7 = arith.addf %4, %6 : vector<16x128xf32>
    %8 = arith.addf %7, %0 : vector<16x128xf32>
    %c0_5 = arith.constant 0 : index
    %c0_6 = arith.constant 0 : index
    %9 = vector.load %arg4[%c0_5, %c0_6] : memref<16x128xf32, #tpu.memory_space<vmem>>, vector<16x128xf32>
    tpu.vector_store %arg4[%c0_5, %c0_6], %8 {strides = array<i32>} : memref<16x128xf32, #tpu.memory_space<vmem>>, vector<16x128xf32>,
    return
  }
  func.func @transform_0(%arg0: i32) -> (i32, i32) {
    %c0_i32 = arith.constant 0 : i32
    %c0_i32_0 = arith.constant 0 : i32
    return %arg0, %c0_i32 : i32, i32
  }
  func.func @transform_1(%arg0: i32) -> (i32, i32) {
    %c0_i32 = arith.constant 0 : i32
    %c0_i32_0 = arith.constant 0 : i32
    %c0_i32_1 = arith.constant 0 : i32
    return %c0_i32, %c0_i32_0 : i32, i32
  }
  func.func @transform_2(%arg0: i32) -> (i32, i32) {
    %c0_i32 = arith.constant 0 : i32
    %c0_i32_0 = arith.constant 0 : i32
    %c0_i32_1 = arith.constant 0 : i32
    return %c0_i32, %c0_i32_0 : i32, i32
  }
  func.func @transform_3(%arg0: i32) -> (i32, i32) {
    %c0_i32 = arith.constant 0 : i32
    %c0_i32_0 = arith.constant 0 : i32
    return %arg0, %c0_i32 : i32, i32
  }
}

</mosaic_0001>

<bundles_post_ra>
// kernel: tpu_custom_call.1
= control target key start
LH: loop header
LB: loop body
LE: loop exit
PB: predicated region body
PF: predicated region fallthrough
CT: control target
= control target key end

     0   :  { %8 = vsyncpa [#allocation3], 0  ;;  %s325_s0 = inlined_call_operand.hbm [shape: f32[16,128], index: 0, kind: input, shape index: {}]   ;;  %s326_s1 = inlined_call_operand.hbm [shape: f32[128,128], index: 1, kind: input, shape index: {}]   ;;  %s327_s2 = inlined_call_operand.vmem [shape: f32[1,128], index: 2, kind: input, shape index: {}]   ;;  %s328_s3 = inlined_call_operand.hbm [shape: f32[16,128], index: 3, kind: output, shape index: {}]  }
   0x1   :  { %9 = vsyncpa [#allocation6], 0 }
   0x2   :  { %10 = vsyncpa [#allocation4], 0  ;;  %s250_s12 = smov [#allocation2]   ;;  %s178_s16 = scalar_lea.hbm %s325_s0, 256 }
   0x3   :  { %s16_s13 = sshll.u32 %s250_s12, 4  ;;  %p179_p0 = scmp.ne.s32.totalorder %s325_s0, %s178_s16  ;;  %s17_s13 = int_to_ptr.vmem [resolvable:$true] %s16_s13 }
   0x4   :  { %p182_p1 = scmp.lt.u32.totalorder %s178_s16, %s325_s0 }
   0x6   :  { %p184_p2 = pnand %p182_p1, %p179_p0 }
   0x8   :  { %187 = shalt.err (!%p184_p2)
}
   0x9   :  { %s188_s21 = scalar_lea.vmem %s17_s13, 256  ;;  %p193_p4 = scmp.lt.s32.totalorder %s17_s13, %s17_s13 }
   0xa   :  { %p189_p3 = scmp.ne.s32.totalorder %s17_s13, %s188_s21  ;;  %p194_p5 = scmp.lt.s32.totalorder %s188_s21, %s188_s21 }
   0xc   :  { %p195_p6 = por %p194_p5, %p193_p4 }
   0xe   :  { %p196_p7 = pnand %p195_p6, %p189_p3 }
  0x10   :  { %199 = shalt.err (!%p196_p7)
}
  0x11   :  { %s251_s22 = smov 128   ;;  %s252_s23 = smov 8  }
  0x12   :  { %22 = dma.hbm_to_vmem [thread:$0]  %s325_s0, 256, %s17_s13, [#allocation3], %s251_s22, %s251_s22, %s252_s23  }
  0x13   :  { %s253_s26 = smov [#allocation5]   ;;  %s200_s30 = scalar_lea.hbm %s326_s1, 2048 }
  0x14   :  { %s28_s27 = sshll.u32 %s253_s26, 4  ;;  %p201_p8 = scmp.ne.s32.totalorder %s326_s1, %s200_s30  ;;  %s29_s27 = int_to_ptr.vmem [resolvable:$true] %s28_s27 }
  0x15   :  { %p204_p9 = scmp.lt.u32.totalorder %s200_s30, %s326_s1 }
  0x17   :  { %p206_p10 = pnand %p204_p9, %p201_p8 }
  0x19   :  { %209 = shalt.err (!%p206_p10)
}
  0x1a   :  { %s210_s8 = scalar_lea.vmem %s29_s27, 2048  ;;  %p215_p12 = scmp.lt.s32.totalorder %s29_s27, %s29_s27 }
  0x1b   :  { %p211_p11 = scmp.ne.s32.totalorder %s29_s27, %s210_s8  ;;  %p216_p13 = scmp.lt.s32.totalorder %s210_s8, %s210_s8 }
  0x1d   :  { %p217_p0 = por %p216_p13, %p215_p12 }
  0x1f   :  { %p218_p1 = pnand %p217_p0, %p211_p11 }
  0x21   :  { %221 = shalt.err (!%p218_p1)
}
  0x22   :  { %34 = dma.hbm_to_vmem [thread:$0]  %s326_s1, 2048, %s29_s27, [#allocation6], %s251_s22, %s251_s22, %s252_s23  }
  0x23   :  { %244 = dma.done.wait [#allocation3], 256  }
  0x24   :  { %245 = vsyncadd [#allocation3], 4294967040 }
  0x25   :  { %246 = dma.done.wait [#allocation6], 2048  }
  0x26   :  { %247 = vsyncadd [#allocation6], 4294965248  ;;  %v254_v0 = vmov 0.0   ;;  %vm255_vm0 = vmmov 0   ;;  %v47_v1 = vld [vmem:[#allocation5] sm:$0xff]  ;;  %v48_v2 = vld [vmem:[#allocation5 + $0x8] sm:$0xff] }
  0x27   :  { %151 = vmatprep.subr.bf16.mxu0 %v254_v0  ;;  %167 = vmatprep.mubr.msk.bf16.mxu0 %vm255_vm0, %v254_v0  ;;  %v49_v3 = vld [vmem:[#allocation5 + $0x10] sm:$0xff]  ;;  %v63_v4 = vpack.c.bf16 %v48_v2, %v47_v1  ;;  %v50_v5 = vld [vmem:[#allocation5 + $0x18] sm:$0xff]  ;;  %v51_v7 = vld [vmem:[#allocation5 + $0x20] sm:$0xff]  ;;  %s256_s11 = smov [#allocation7]  }
  0x28   :  { %v64_v6 = vpack.c.bf16 %v50_v5, %v49_v3  ;;  %v52_v8 = vld [vmem:[#allocation5 + $0x28] sm:$0xff]  ;;  %v53_v10 = vld [vmem:[#allocation5 + $0x30] sm:$0xff]  ;;  %v54_v11 = vld [vmem:[#allocation5 + $0x38] sm:$0xff]  ;;  %s128_s12 = sshll.u32 %s256_s11, 4  ;;  %s129_s12 = int_to_ptr.vmem [resolvable:$true] %s128_s12 }
  0x29   :  { %152 = vmatpush3.bf16.msra.mxu0 %v63_v4  ;;  %v65_v9 = vpack.c.bf16 %v52_v8, %v51_v7  ;;  %v66_v12 = vpack.c.bf16 %v54_v11, %v53_v10  ;;  %v55_v13 = vld [vmem:[#allocation5 + $0x40] sm:$0xff]  ;;  %v56_v14 = vld [vmem:[#allocation5 + $0x48] sm:$0xff]  ;;  %v57_v16 = vld [vmem:[#allocation5 + $0x50] sm:$0xff]  ;;  %s222_s13 = scalar_lea.vmem %s129_s12, 256  ;;  %p227_p3 = scmp.lt.s32.totalorder %s129_s12, %s129_s12 }
  0x2a   :  { %153 = vmatprep.subr.bf16.mxu0 %v254_v0  ;;  %v67_v15 = vpack.c.bf16 %v56_v14, %v55_v13  ;;  %v58_v17 = vld [vmem:[#allocation5 + $0x58] sm:$0xff]  ;;  %v59_v19 = vld [vmem:[#allocation5 + $0x60] sm:$0xff]  ;;  %v60_v20 = vld [vmem:[#allocation5 + $0x68] sm:$0xff]  ;;  %p223_p2 = scmp.ne.s32.totalorder %s129_s12, %s222_s13  ;;  %p228_p4 = scmp.lt.s32.totalorder %s222_s13, %s222_s13 }
  0x2b   :  { %v68_v18 = vpack.c.bf16 %v58_v17, %v57_v16  ;;  %v69_v21 = vpack.c.bf16 %v60_v20, %v59_v19  ;;  %v61_v22 = vld [vmem:[#allocation5 + $0x70] sm:$0xff]  ;;  %v62_v23 = vld [vmem:[#allocation5 + $0x78] sm:$0xff] }
  0x2c   :  { %v70_v24 = vpack.c.bf16 %v62_v23, %v61_v22  ;;  %v44_v25 = vld [vmem:[#allocation2] sm:$0xff]  ;;  %v45_v26 = vld [vmem:[#allocation2 + $0x8] sm:$0xff]  ;;  %p229_p5 = por %p228_p4, %p227_p3 }
  0x2d   :  { %154 = vmatpush3.bf16.msra.mxu0 %v64_v6  ;;  %v46_v27 = vpack.c.bf16 %v45_v26, %v44_v25  ;;  %v141_v28 = vld [vmem:[%s327_s2] ss:$0 sm:$0xff] }
  0x2e   :  { %155 = vmatprep.subr.bf16.mxu0 %v254_v0  ;;  %p230_p6 = pnand %p229_p5, %p223_p2 }
  0x31   :  { %156 = vmatpush3.bf16.msra.mxu0 %v65_v9 }
  0x32   :  { %157 = vmatprep.subr.bf16.mxu0 %v254_v0 }
  0x35   :  { %158 = vmatpush3.bf16.msra.mxu0 %v66_v12 }
  0x36   :  { %159 = vmatprep.subr.bf16.mxu0 %v254_v0 }
  0x39   :  { %160 = vmatpush3.bf16.msra.mxu0 %v67_v15 }
  0x3a   :  { %161 = vmatprep.subr.bf16.mxu0 %v254_v0 }
  0x3d   :  { %162 = vmatpush3.bf16.msra.mxu0 %v68_v18 }
  0x3e   :  { %163 = vmatprep.subr.bf16.mxu0 %v254_v0 }
  0x41   :  { %164 = vmatpush3.bf16.msra.mxu0 %v69_v21 }
  0x42   :  { %165 = vmatprep.subr.bf16.mxu0 %v254_v0 }
  0x45   :  { %166 = vmatpush3.bf16.msra.mxu0 %v70_v24 }
  0x48   :  { %168 = vmatmul.mubr.bf16.vlgmr.msra.gmra.mrb[0].mxu0 %v46_v27 }
 0x11b   :  { %v112_v29 = vpop.f32.mrb[0].mxu0 }
 0x11c   :  { %v113_v30 = vadd.f32 %v141_v28, %v112_v29  ;;  %v169_v31 = vpop.f32.mrb[1].mxu0 }
 0x11d   :  { %v115_v32 = vpop.f32.mrb[2].mxu0 }
 0x11e   :  { %v119_v33 = vadd.f32 %v113_v30, %v44_v25  ;;  %v116_v34 = vadd.f32 %v141_v28, %v115_v32  ;;  %v170_v35 = vpop.f32.mrb[3].mxu0 }
 0x120   :  { %121 = vst [vmem:[#allocation7] sm:$0xff] %v119_v33  ;;  %v120_v36 = vadd.f32 %v116_v34, %v45_v26 }
 0x122   :  { %122 = vst [vmem:[#allocation7 + $0x8] sm:$0xff] %v120_v36 }
 0x123   :  { %233 = shalt.err (!%p230_p6)
}
 0x124   :  { %s234_s15 = scalar_lea.hbm %s328_s3, 256 }
 0x125   :  { %p235_p7 = scmp.ne.s32.totalorder %s328_s3, %s234_s15  ;;  %p238_p8 = scmp.lt.u32.totalorder %s234_s15, %s328_s3 }
 0x127   :  { %p240_p9 = pnand %p238_p8, %p235_p7 }
 0x129   :  { %243 = shalt.err (!%p240_p9)
}
 0x12a   :  { %134 = dma.vmem_to_hbm [thread:$0]  %s129_s12, 256, %s328_s3, [#allocation4], %s251_s22, %s251_s22, %s252_s23  }
 0x12b   :  { %248 = dma.done.wait [#allocation4], 256  }
 0x12c   :  { %249 = vsyncadd [#allocation4], 4294967040 }
 0x12d   :  { %138 = vsyncpa [#allocation3], 1 }
 0x12e   :  { %139 = vsyncpa [#allocation6], 1 }
 0x12f   :  { %140 = vsyncpa [#allocation4], 1 }

</bundles_post_ra>
